<compile_context>
chip_gen: v6e
topology: v6e:2x2x1
jax: 0.10.0
libtpu: 0.0.40
codegen_flags: <defaults>
</compile_context>

<pallas_src>
import numpy as np
import jax
import jax.numpy as jnp
from jax.experimental import pallas as pl
from jax.experimental.pallas import tpu as pltpu


def _dft_matrix(n):
    """scipy.linalg.dft(n) split into (real, imag) float64 parts."""
    k = np.arange(n, dtype=np.float64)
    ang = -2.0 * np.pi * np.outer(k, k) / n
    return np.cos(ang), np.sin(ang)


def make_fourier_params(seq_len, hidden_size, num_row_tiles=1, dtype=jnp.bfloat16):
    """Build the stacked / row-tiled DFT operands used by the kernel.

    Returns:
      ds_tiled: (num_row_tiles, 2*tq, S)  -- tile i holds [A_rows_i ; B_rows_i]
      dh      : (2*H, H)                  -- [C ; -D]
    so that per row tile i and batch element b:
      t = ds_tiled[i] @ x_b        (2*tq, H) == [A_i x_b ; B_i x_b]
      y = t[:tq] @ C + t[tq:] @ (-D) == A_i x_b C - B_i x_b D
    For production, pick num_row_tiles so that tq is a multiple of 256 (128 on v5e) to keep the
    MXU M dims aligned, and >= 2 row tiles per TensorCore on v7x.
    """
    a, b = _dft_matrix(seq_len)
    c, d = _dft_matrix(hidden_size)
    assert seq_len % num_row_tiles == 0
    tq = seq_len // num_row_tiles
    ds_tiled = np.stack(
        [np.concatenate([a[i * tq:(i + 1) * tq], b[i * tq:(i + 1) * tq]], axis=0)
         for i in range(num_row_tiles)],
        axis=0)
    dh = np.concatenate([c, -d], axis=0)
    return jnp.asarray(ds_tiled, dtype=dtype), jnp.asarray(dh, dtype=dtype)


def _fourier_kernel(x_ref, ds_ref, dh_ref, o_ref, t_acc):
    # x_ref : (B, tk, H)      compute dtype, K-tile of the input (revisited across row tiles)
    # ds_ref: (1, 2*tq, tk)   K-tile of stacked [A_rows ; B_rows] for this row tile
    # dh_ref: (2*H, H)        stacked [C ; -D], grid-constant (Buffered(1))
    # o_ref : (B, tq, H)      float32 output rows for this row tile (resident across k)
    # t_acc : (B, 2*tq, H)    f32 VMEM accumulator for the seq-axis DFT
    nb, tq, h = o_ref.shape
    k = pl.program_id(1)

    @pl.when(k == 0)
    def _():
        t_acc[...] = jnp.zeros_like(t_acc)

    # Stage 1 (seq-axis DFT), K-tiled over S: one stacked dot per (small) batch element.
    ds = ds_ref[0]                                   # (2*tq, tk)
    for b in range(nb):                              # static python loop over the batch dim
        t_acc[b] += jnp.dot(ds, x_ref[b], preferred_element_type=jnp.float32)

    # Stage 2 (hidden-axis DFT + real-part combine) on the last K step only.  Two K=H dots per
    # batch element accumulated directly into the store -- no concat / re-cast / slice-back
    # intermediates (pure MXU work; same MAC count as one K=2H dot).
    @pl.when(k == pl.num_programs(1) - 1)
    def _():
        dh = dh_ref[...]                             # (2*H, H)
        dh_c = dh[:h]                                # C
        dh_md = dh[h:]                               # -D
        for b in range(nb):
            t = t_acc[b]                             # (2*tq, H) f32
            yr = jnp.dot(t[:tq].astype(dh.dtype), dh_c,
                         preferred_element_type=jnp.float32)
            yi = jnp.dot(t[tq:].astype(dh.dtype), dh_md,
                         preferred_element_type=jnp.float32)
            o_ref[b] = (yr + yi).astype(o_ref.dtype)  # (Ax)C - (Bx)D


def fourier_mm_layer(x, ds_tiled, dh, *, k_tile=None,
                     vmem_limit_bytes=48 * 1024 * 1024):
    """x: [B, S, H] real -> [B, S, H] float32 = real(DFT_seq @ x @ DFT_hidden)."""
    B, S, H = x.shape
    num_row_tiles, two_tq, s_chk = ds_tiled.shape
    tq = two_tq // 2
    assert s_chk == S and tq * num_row_tiles == S and dh.shape == (2 * H, H)
    assert tq % 8 == 0, "row tile must stay sublane-aligned"

    # K (seq contraction) tile: full S for small problems, 512-wide lane-aligned chunks for
    # production so DS / x residency stays bounded and the DMA stream pipelines behind the MXU.
    if k_tile is None:
        k_tile = S if S <= 512 else 512
    assert S % k_tile == 0
    assert k_tile == S or k_tile % 128 == 0, "K tile must be lane-aligned or equal S"
    num_k = S // k_tile

    # bf16 inputs by default: 2x256 MXU rate on v6e/v7x and half the DMA bytes (f32 accumulation
    # is kept via preferred_element_type inside the kernel).
    x_c = x.astype(ds_tiled.dtype)

    return pl.pallas_call(
        _fourier_kernel,
        out_shape=jax.ShapeDtypeStruct((B, S, H), jnp.float32),
        grid_spec=pltpu.PrefetchScalarGridSpec(
            num_scalar_prefetch=0,
            # Row-tile axis is "parallel" (megacore sharding on v7x); seq-contraction axis is the
            # trailing "arbitrary" reduction axis feeding the f32 accumulator.
            grid=(num_row_tiles, num_k),
            in_specs=[
                # x: K-tiled stream, revisited across row tiles (default double-buffered).
                pl.BlockSpec((B, k_tile, H), lambda i, k: (0, k, 0)),
                # DS row/K tile of [A;B]: the main streamed operand (default double-buffered).
                pl.BlockSpec((1, two_tq, k_tile), lambda i, k: (i, 0, k)),
                # DH = [C;-D]: grid-constant -> single buffer, fetched once.
                pl.BlockSpec((2 * H, H), lambda i, k: (0, 0),
                             pipeline_mode=pl.Buffered(1)),
            ],
            out_specs=pl.BlockSpec((B, tq, H), lambda i, k: (0, i, 0)),
            scratch_shapes=[pltpu.VMEM((B, two_tq, H), jnp.float32)],
        ),
        compiler_params=pltpu.CompilerParams(
            dimension_semantics=("parallel", "arbitrary"),
            vmem_limit_bytes=vmem_limit_bytes),
    )(x_c, ds_tiled, dh)


def _reference(x, S, H):
    """numpy complex128 reference, exactly like the PyTorch module."""
    a_np, b_np = _dft_matrix(S)
    c_np, d_np = _dft_matrix(H)
    dft_seq = a_np + 1j * b_np
    dft_hid = c_np + 1j * d_np
    x_np = np.asarray(x).astype(np.complex128)
    return np.real(dft_seq @ x_np @ dft_hid).astype(np.float32)


if __name__ == "__main__":
    key = jax.random.PRNGKey(0)

    # ---- Toy config from the module spec: max_position_embeddings=16, hidden_size=32 ----
    # num_row_tiles=1: at this size the grid collapses to a single step (all overhead otherwise).
    B, S, H = 2, 16, 32
    x = jax.random.normal(key, (B, S, H), dtype=jnp.float32)
    ref = _reference(x, S, H)

    # f32 compute path: tight check against the complex128 reference.
    ds32, dh32 = make_fourier_params(S, H, num_row_tiles=1, dtype=jnp.float32)
    out_f32 = jax.block_until_ready(fourier_mm_layer(x, ds32, dh32))
    np.testing.assert_allclose(np.asarray(out_f32), ref, rtol=1e-4, atol=1e-3)

    # bf16-input / f32-accumulate path (v6e/v7x MXU rate): norm-relative check.
    dsbf, dhbf = make_fourier_params(S, H, num_row_tiles=1, dtype=jnp.bfloat16)
    out_bf16 = jax.block_until_ready(fourier_mm_layer(x, dsbf, dhbf))
    rel_err = np.linalg.norm(np.asarray(out_bf16) - ref) / np.linalg.norm(ref)
    assert rel_err < 2e-2, f"bf16 path relative error too large: {rel_err}"

    # ---- Larger config exercising the row-tiled + K-tiled grid (2, 2) accumulation path ----
    B2, S2, H2 = 2, 256, 128
    x2 = jax.random.normal(jax.random.fold_in(key, 1), (B2, S2, H2), dtype=jnp.float32)
    ref2 = _reference(x2, S2, H2)
    ds2, dh2 = make_fourier_params(S2, H2, num_row_tiles=2, dtype=jnp.float32)
    out2 = jax.block_until_ready(fourier_mm_layer(x2, ds2, dh2, k_tile=128))
    np.testing.assert_allclose(np.asarray(out2), ref2, rtol=5e-4, atol=5e-2)

    print("KERNEL_OK")
</pallas_src>

<mosaic_0001>
module attributes {stable_mosaic.version = 11 : i64} {
  func.func @_fourier_kernel(%arg0: i32, %arg1: i32, %arg2: memref<2x16x32xf32, #tpu.memory_space<vmem>>, %arg3: memref<1x32x16xf32, #tpu.memory_space<vmem>>, %arg4: memref<64x32xf32, #tpu.memory_space<vmem>>, %arg5: memref<2x16x32xf32, #tpu.memory_space<vmem>>, %arg6: memref<2x32x32xf32, #tpu.memory_space<vmem>>) attributes {dimension_semantics = [#tpu.dimension_semantics<parallel>, #tpu.dimension_semantics<arbitrary>], iteration_bounds = array<i64: 1, 1>, scalar_prefetch = 0 : i64, scratch_operands = 1 : i64, tpu.core_type = #tpu.core_type<tc>, window_params = [{transform_indices = @transform_0, window_bounds = array<i64: 2, 16, 32>}, {transform_indices = @transform_1, window_bounds = array<i64: 1, 32, 16>}, {pipeline_mode = #tpu.pipeline_mode<synchronous>, transform_indices = @transform_2, window_bounds = array<i64: 64, 32>}, {transform_indices = @transform_3, window_bounds = array<i64: 2, 16, 32>}]} {
    %c0_i32 = arith.constant 0 : i32
    %0 = arith.cmpi eq, %arg1, %c0_i32 : i32
    %1 = arith.extui %0 : i1 to i32
    %c0_i32_0 = arith.constant 0 : i32
    %2 = arith.cmpi ne, %1, %c0_i32_0 : i32
    scf.if %2 {
      %cst_23 = arith.constant 0.000000e+00 : f32
      %26 = vector.broadcast %cst_23 : f32 to vector<2x32x32xf32>
      %c0_24 = arith.constant 0 : index
      %c0_25 = arith.constant 0 : index
      %c0_26 = arith.constant 0 : index
      %27 = vector.load %arg6[%c0_24, %c0_25, %c0_26] : memref<2x32x32xf32, #tpu.memory_space<vmem>>, vector<2x32x32xf32>
      tpu.vector_store %arg6[%c0_24, %c0_25, %c0_26], %26 {strides = array<i32>} : memref<2x32x32xf32, #tpu.memory_space<vmem>>, vector<2x32x32xf32>,
    } else {
    }
    %c0 = arith.constant 0 : index
    %c0_1 = arith.constant 0 : index
    %c0_2 = arith.constant 0 : index
    %3 = vector.load %arg3[%c0, %c0_1, %c0_2] : memref<1x32x16xf32, #tpu.memory_space<vmem>>, vector<1x32x16xf32>
    %4 = vector.shape_cast %3 : vector<1x32x16xf32> to vector<32x16xf32>
    %c0_3 = arith.constant 0 : index
    %c0_4 = arith.constant 0 : index
    %c0_5 = arith.constant 0 : index
    %5 = vector.load %arg6[%c0_3, %c0_4, %c0_5] : memref<2x32x32xf32, #tpu.memory_space<vmem>>, vector<1x32x32xf32>
    %6 = vector.shape_cast %5 : vector<1x32x32xf32> to vector<32x32xf32>
    %c0_6 = arith.constant 0 : index
    %c0_7 = arith.constant 0 : index
    %c0_8 = arith.constant 0 : index
    %7 = vector.load %arg2[%c0_6, %c0_7, %c0_8] : memref<2x16x32xf32, #tpu.memory_space<vmem>>, vector<1x16x32xf32>
    %8 = vector.shape_cast %7 : vector<1x16x32xf32> to vector<16x32xf32>
    %cst = arith.constant dense<0.000000e+00> : vector<32x32xf32>
    %9 = tpu.matmul %4, %8, %cst {dimension_numbers = #tpu.dot_dimension_numbers<[1], [0], [0], [1], [0, 0, 1, 1], [], []>} : vector<32x16xf32>, vector<16x32xf32>, vector<32x32xf32> -> vector<32x32xf32>
    %10 = arith.addf %6, %9 : vector<32x32xf32>
    %c0_9 = arith.constant 0 : index
    %c0_10 = arith.constant 0 : index
    %c0_11 = arith.constant 0 : index
    %11 = vector.load %arg6[%c0_9, %c0_10, %c0_11] : memref<2x32x32xf32, #tpu.memory_space<vmem>>, vector<1x32x32xf32>
    %12 = vector.shape_cast %11 : vector<1x32x32xf32> to vector<32x32xf32>
    %13 = vector.shape_cast %10 : vector<32x32xf32> to vector<1x32x32xf32>
    tpu.vector_store %arg6[%c0_9, %c0_10, %c0_11], %13 {strides = array<i32>} : memref<2x32x32xf32, #tpu.memory_space<vmem>>, vector<1x32x32xf32>,
    %c1 = arith.constant 1 : index
    %c0_12 = arith.constant 0 : index
    %c0_13 = arith.constant 0 : index
    %14 = vector.load %arg6[%c1, %c0_12, %c0_13] : memref<2x32x32xf32, #tpu.memory_space<vmem>>, vector<1x32x32xf32>
    %15 = vector.shape_cast %14 : vector<1x32x32xf32> to vector<32x32xf32>
    %c1_14 = arith.constant 1 : index
    %c0_15 = arith.constant 0 : index
    %c0_16 = arith.constant 0 : index
    %16 = vector.load %arg2[%c1_14, %c0_15, %c0_16] : memref<2x16x32xf32, #tpu.memory_space<vmem>>, vector<1x16x32xf32>
    %17 = vector.shape_cast %16 : vector<1x16x32xf32> to vector<16x32xf32>
    %cst_17 = arith.constant dense<0.000000e+00> : vector<32x32xf32>
    %18 = tpu.matmul %4, %17, %cst_17 {dimension_numbers = #tpu.dot_dimension_numbers<[1], [0], [0], [1], [0, 0, 1, 1], [], []>} : vector<32x16xf32>, vector<16x32xf32>, vector<32x32xf32> -> vector<32x32xf32>
    %19 = arith.addf %15, %18 : vector<32x32xf32>
    %c1_18 = arith.constant 1 : index
    %c0_19 = arith.constant 0 : index
    %c0_20 = arith.constant 0 : index
    %20 = vector.load %arg6[%c1_18, %c0_19, %c0_20] : memref<2x32x32xf32, #tpu.memory_space<vmem>>, vector<1x32x32xf32>
    %21 = vector.shape_cast %20 : vector<1x32x32xf32> to vector<32x32xf32>
    %22 = vector.shape_cast %19 : vector<32x32xf32> to vector<1x32x32xf32>
    tpu.vector_store %arg6[%c1_18, %c0_19, %c0_20], %22 {strides = array<i32>} : memref<2x32x32xf32, #tpu.memory_space<vmem>>, vector<1x32x32xf32>,
    %c0_i32_21 = arith.constant 0 : i32
    %23 = arith.cmpi eq, %arg1, %c0_i32_21 : i32
    %24 = arith.extui %23 : i1 to i32
    %c0_i32_22 = arith.constant 0 : i32
    %25 = arith.cmpi ne, %24, %c0_i32_22 : i32
    scf.if %25 {
      %c0_23 = arith.constant 0 : index
      %c0_24 = arith.constant 0 : index
      %26 = vector.load %arg4[%c0_23, %c0_24] : memref<64x32xf32, #tpu.memory_space<vmem>>, vector<64x32xf32>
      %27 = vector.extract_strided_slice %26 {offsets = [0, 0], sizes = [32, 32], strides = [1, 1]} : vector<64x32xf32> to vector<32x32xf32>
      %28 = vector.extract_strided_slice %26 {offsets = [32, 0], sizes = [32, 32], strides = [1, 1]} : vector<64x32xf32> to vector<32x32xf32>
      %c0_25 = arith.constant 0 : index
      %c0_26 = arith.constant 0 : index
      %c0_27 = arith.constant 0 : index
      %29 = vector.load %arg6[%c0_25, %c0_26, %c0_27] : memref<2x32x32xf32, #tpu.memory_space<vmem>>, vector<1x32x32xf32>
      %30 = vector.shape_cast %29 : vector<1x32x32xf32> to vector<32x32xf32>
      %31 = vector.extract_strided_slice %30 {offsets = [0, 0], sizes = [16, 32], strides = [1, 1]} : vector<32x32xf32> to vector<16x32xf32>
      %cst_28 = arith.constant dense<0.000000e+00> : vector<16x32xf32>
      %32 = tpu.matmul %31, %27, %cst_28 {dimension_numbers = #tpu.dot_dimension_numbers<[1], [0], [0], [1], [0, 0, 1, 1], [], []>} : vector<16x32xf32>, vector<32x32xf32>, vector<16x32xf32> -> vector<16x32xf32>
      %33 = vector.extract_strided_slice %30 {offsets = [16, 0], sizes = [16, 32], strides = [1, 1]} : vector<32x32xf32> to vector<16x32xf32>
      %cst_29 = arith.constant dense<0.000000e+00> : vector<16x32xf32>
      %34 = tpu.matmul %33, %28, %cst_29 {dimension_numbers = #tpu.dot_dimension_numbers<[1], [0], [0], [1], [0, 0, 1, 1], [], []>} : vector<16x32xf32>, vector<32x32xf32>, vector<16x32xf32> -> vector<16x32xf32>
      %35 = arith.addf %32, %34 : vector<16x32xf32>
      %c0_30 = arith.constant 0 : index
      %c0_31 = arith.constant 0 : index
      %c0_32 = arith.constant 0 : index
      %36 = vector.load %arg5[%c0_30, %c0_31, %c0_32] : memref<2x16x32xf32, #tpu.memory_space<vmem>>, vector<1x16x32xf32>
      %37 = vector.shape_cast %36 : vector<1x16x32xf32> to vector<16x32xf32>
      %38 = vector.shape_cast %35 : vector<16x32xf32> to vector<1x16x32xf32>
      tpu.vector_store %arg5[%c0_30, %c0_31, %c0_32], %38 {strides = array<i32>} : memref<2x16x32xf32, #tpu.memory_space<vmem>>, vector<1x16x32xf32>,
      %c1_33 = arith.constant 1 : index
      %c0_34 = arith.constant 0 : index
      %c0_35 = arith.constant 0 : index
      %39 = vector.load %arg6[%c1_33, %c0_34, %c0_35] : memref<2x32x32xf32, #tpu.memory_space<vmem>>, vector<1x32x32xf32>
      %40 = vector.shape_cast %39 : vector<1x32x32xf32> to vector<32x32xf32>
      %41 = vector.extract_strided_slice %40 {offsets = [0, 0], sizes = [16, 32], strides = [1, 1]} : vector<32x32xf32> to vector<16x32xf32>
      %cst_36 = arith.constant dense<0.000000e+00> : vector<16x32xf32>
      %42 = tpu.matmul %41, %27, %cst_36 {dimension_numbers = #tpu.dot_dimension_numbers<[1], [0], [0], [1], [0, 0, 1, 1], [], []>} : vector<16x32xf32>, vector<32x32xf32>, vector<16x32xf32> -> vector<16x32xf32>
      %43 = vector.extract_strided_slice %40 {offsets = [16, 0], sizes = [16, 32], strides = [1, 1]} : vector<32x32xf32> to vector<16x32xf32>
      %cst_37 = arith.constant dense<0.000000e+00> : vector<16x32xf32>
      %44 = tpu.matmul %43, %28, %cst_37 {dimension_numbers = #tpu.dot_dimension_numbers<[1], [0], [0], [1], [0, 0, 1, 1], [], []>} : vector<16x32xf32>, vector<32x32xf32>, vector<16x32xf32> -> vector<16x32xf32>
      %45 = arith.addf %42, %44 : vector<16x32xf32>
      %c1_38 = arith.constant 1 : index
      %c0_39 = arith.constant 0 : index
      %c0_40 = arith.constant 0 : index
      %46 = vector.load %arg5[%c1_38, %c0_39, %c0_40] : memref<2x16x32xf32, #tpu.memory_space<vmem>>, vector<1x16x32xf32>
      %47 = vector.shape_cast %46 : vector<1x16x32xf32> to vector<16x32xf32>
      %48 = vector.shape_cast %45 : vector<16x32xf32> to vector<1x16x32xf32>
      tpu.vector_store %arg5[%c1_38, %c0_39, %c0_40], %48 {strides = array<i32>} : memref<2x16x32xf32, #tpu.memory_space<vmem>>, vector<1x16x32xf32>,
    } else {
    }
    return
  }
  func.func @transform_0(%arg0: i32, %arg1: i32) -> (i32, i32, i32) {
    %c0_i32 = arith.constant 0 : i32
    %c0_i32_0 = arith.constant 0 : i32
    %c0_i32_1 = arith.constant 0 : i32
    return %c0_i32, %arg1, %c0_i32_0 : i32, i32, i32
  }
  func.func @transform_1(%arg0: i32, %arg1: i32) -> (i32, i32, i32) {
    %c0_i32 = arith.constant 0 : i32
    %c0_i32_0 = arith.constant 0 : i32
    return %arg0, %c0_i32, %arg1 : i32, i32, i32
  }
  func.func @transform_2(%arg0: i32, %arg1: i32) -> (i32, i32) {
    %c0_i32 = arith.constant 0 : i32
    %c0_i32_0 = arith.constant 0 : i32
    %c0_i32_1 = arith.constant 0 : i32
    return %c0_i32, %c0_i32_0 : i32, i32
  }
  func.func @transform_3(%arg0: i32, %arg1: i32) -> (i32, i32, i32) {
    %c0_i32 = arith.constant 0 : i32
    %c0_i32_0 = arith.constant 0 : i32
    %c0_i32_1 = arith.constant 0 : i32
    return %c0_i32, %arg0, %c0_i32_0 : i32, i32, i32
  }
}

</mosaic_0001>

<bundles_post_ra>
// kernel: tpu_custom_call.1
= control target key start
LH: loop header
LB: loop body
LE: loop exit
PB: predicated region body
PF: predicated region fallthrough
CT: control target
= control target key end

     0   :  { %vm38_vm0 = vcmask 130048   ;;  %vm19_vm1 = vcmask 261120   ;;  %v754_v4 = vmov 0.0   ;;  %s901_s0 = inlined_call_operand.vmem [shape: f32[2,16,32], index: 0, kind: input, shape index: {}]   ;;  %s902_s1 = inlined_call_operand.vmem [shape: f32[1,32,16], index: 1, kind: input, shape index: {}]   ;;  %s903_s2 = inlined_call_operand.vmem [shape: f32[64,32], index: 2, kind: input, shape index: {}]   ;;  %s904_s3 = inlined_call_operand.hbm [shape: f32[2,16,32], index: 3, kind: output, shape index: {}]  }
   0x1   :  { %v37_v0 = vld [vmem:[%s901_s0 + $0x8] sm:$0xff]  ;;  %v36_v1 = vld [vmem:[%s901_s0] sm:$0xff]  ;;  %v615_v3 = vld [vmem:[%s901_s0 + $0x18] sm:$0xff]  ;;  %21 = vst.msk [vmem:[#allocation2 + $0x8] sm:$0xff] %vm19_vm1, %v754_v4 }
   0x2   :  { %v28_v2 = vld [vmem:[%s902_s1] sm:$0xff]  ;;  %664 = vmatprep.subr.mxu0 %v37_v0  ;;  %20 = vst.msk [vmem:[#allocation2] sm:$0xff] %vm19_vm1, %v754_v4  ;;  %22 = vst.msk [vmem:[#allocation2 + $0x10] sm:$0xff] %vm19_vm1, %v754_v4  ;;  %v29_v5 = vld [vmem:[%s902_s1 + $0x8] sm:$0xff]  ;;  %674 = vmatprep.subr.mxu1 %v615_v3 }
   0x3   :  { %668 = vmatprep.mubr.msk.f32.mxu0 %vm38_vm0, %v28_v2  ;;  %23 = vst.msk [vmem:[#allocation2 + $0x18] sm:$0xff] %vm19_vm1, %v754_v4  ;;  %24 = vst.msk [vmem:[#allocation2 + $0x20] sm:$0xff] %vm19_vm1, %v754_v4  ;;  %665 = vmatpush3.msra.mxu0 %v37_v0  ;;  %v614_v6 = vld [vmem:[%s901_s0 + $0x10] sm:$0xff] }
   0x4   :  { %25 = vst.msk [vmem:[#allocation2 + $0x28] sm:$0xff] %vm19_vm1, %v754_v4  ;;  %26 = vst.msk [vmem:[#allocation2 + $0x30] sm:$0xff] %vm19_vm1, %v754_v4 }
   0x5   :  { %27 = vst.msk [vmem:[#allocation2 + $0x38] sm:$0xff] %vm19_vm1, %v754_v4 }
   0x6   :  { %8 = vsyncpa [#allocation4], 0  ;;  %666 = vmatprep.subr.mxu0 %v36_v1  ;;  %675 = vmatpush3.msra.mxu1 %v615_v3  ;;  %v30_v7 = vld [vmem:[%s902_s1 + $0x10] sm:$0xff]  ;;  %v31_v8 = vld [vmem:[%s902_s1 + $0x18] sm:$0xff] }
   0x7   :  { %667 = vmatpush3.msra.mxu0 %v36_v1  ;;  %676 = vmatprep.subr.mxu1 %v614_v6  ;;  %v252_v9 = vld [vmem:[%s903_s2 + $0x18] sm:$0xff]  ;;  %v824_v10 = vld [vmem:[%s903_s2 + $0x10] sm:$0xff]  ;;  %v836_v12 = vld [vmem:[%s903_s2 + $0x8] sm:$0xff] }
   0x8   :  { %669 = vmatmul.mubr.msk.f32.vlgmr.msra.gmra.mxu0 %vm38_vm0, %v29_v5  ;;  %677 = vmatpush3.msra.mxu1 %v614_v6  ;;  %v831_v11 = vld [vmem:[%s903_s2 + $0x38] sm:$0xff]  ;;  %v845_v13 = vld [vmem:[%s903_s2 + $0x30] sm:$0xff]  ;;  %v850_v14 = vld [vmem:[%s903_s2] sm:$0xff] }
   0x9   :  { %671 = vmatprep.mubr.msk.f32.mxu0 %vm38_vm0, %v30_v7  ;;  %678 = vmatprep.mubr.msk.f32.mxu1 %vm38_vm0, %v28_v2  ;;  %v857_v15 = vld [vmem:[%s903_s2 + $0x28] sm:$0xff]  ;;  %v253_v16 = vld [vmem:[%s903_s2 + $0x20] sm:$0xff]  ;;  %v34_v29 = vld [vmem:[#allocation2 + $0x10] sm:$0xff]  ;;  %s755_s2 = smov [#allocation3]  }
   0xa   :  { %679 = vmatmul.mubr.msk.f32.vlgmr.msra.gmra.mxu1 %vm38_vm0, %v29_v5  ;;  %695 = vmatprep.subr.mxu1 %v252_v9  ;;  %v33_v17 = vld [vmem:[#allocation2 + $0x8] sm:$0xff]  ;;  %v32_v19 = vld [vmem:[#allocation2] sm:$0xff]  ;;  %v35_v23 = vld [vmem:[#allocation2 + $0x18] sm:$0xff]  ;;  %s599_s15 = sshll.u32 %s755_s2, 4  ;;  %s600_s15 = int_to_ptr.vmem [resolvable:$true] %s599_s15 }
   0xb   :  { %681 = vmatprep.mubr.msk.f32.mxu1 %vm38_vm0, %v30_v7  ;;  %696 = vmatpush3.msra.mxu1 %v252_v9  ;;  %v147_v20 = vld [vmem:[#allocation2 + $0x28] sm:$0xff]  ;;  %v146_v25 = vld [vmem:[#allocation2 + $0x20] sm:$0xff]  ;;  %v148_v36 = vld [vmem:[#allocation2 + $0x30] sm:$0xff]  ;;  %s732_s16 = scalar_lea.vmem %s600_s15, 512  ;;  %p737_p1 = scmp.lt.s32.totalorder %s600_s15, %s600_s15 }
   0xc   :  { %672 = vmatmul.mubr.msk.f32.gmra.mxu0 %vm38_vm0, %v31_v8  ;;  %697 = vmatprep.subr.mxu1 %v824_v10  ;;  %v149_v31 = vld [vmem:[#allocation2 + $0x38] sm:$0xff]  ;;  %p733_p0 = scmp.ne.s32.totalorder %s600_s15, %s732_s16  ;;  %p738_p2 = scmp.lt.s32.totalorder %s732_s16, %s732_s16 }
   0xd   :  { %698 = vmatpush3.msra.mxu1 %v824_v10  ;;  %684 = vmatprep.subr.mxu0 %v831_v11 }
   0xe   :  { %682 = vmatmul.mubr.msk.f32.gmra.mxu1 %vm38_vm0, %v31_v8  ;;  %699 = vmatprep.subr.mxu1 %v836_v12  ;;  %p739_p3 = por %p738_p2, %p737_p1 }
   0xf   :  { %685 = vmatpush3.msra.mxu0 %v831_v11  ;;  %700 = vmatpush3.msra.mxu1 %v836_v12 }
  0x10   :  { %686 = vmatprep.subr.mxu0 %v845_v13  ;;  %701 = vmatprep.subr.mxu1 %v850_v14  ;;  %p740_p4 = pnand %p739_p3, %p733_p0 }
  0x11   :  { %687 = vmatpush3.msra.mxu0 %v845_v13  ;;  %702 = vmatpush3.msra.mxu1 %v850_v14 }
  0x12   :  { %688 = vmatprep.subr.mxu0 %v857_v15  ;;  %717 = vmatprep.subr.mxu1 %v252_v9 }
  0x13   :  { %689 = vmatpush3.msra.mxu0 %v857_v15 }
  0x14   :  { %690 = vmatprep.subr.mxu0 %v253_v16 }
  0x15   :  { %691 = vmatpush3.msra.mxu0 %v253_v16 }
  0x16   :  { %706 = vmatprep.subr.mxu0 %v831_v11 }
  0xc8   :  { %v670_v18 = vpop.f32.mrf.mxu0 }
  0xc9   :  { %v137_v21 = vadd.f32 %v670_v18, %v33_v17 }
  0xca   :  { %v117_v22 = vpop.f32.mrf.mxu0  ;;  %v680_v24 = vpop.f32.mrf.mxu1 }
  0xcb   :  { %142 = vst.msk [vmem:[#allocation2 + $0x8] sm:$0xff] %vm19_vm1, %v137_v21  ;;  %v136_v26 = vadd.f32 %v117_v22, %v32_v19  ;;  %v239_v27 = vadd.f32 %v680_v24, %v147_v20 }
  0xcc   :  { %v673_v28 = vpop.f32.mrf.mxu0  ;;  %v219_v30 = vpop.f32.mrf.mxu1 }
  0xcd   :  { %141 = vst.msk [vmem:[#allocation2] sm:$0xff] %vm19_vm1, %v136_v26  ;;  %v139_v32 = vadd.f32 %v673_v28, %v35_v23  ;;  %243 = vst.msk [vmem:[#allocation2 + $0x28] sm:$0xff] %vm19_vm1, %v239_v27  ;;  %v238_v33 = vadd.f32 %v219_v30, %v146_v25 }
  0xce   :  { %v127_v34 = vpop.f32.mrf.mxu0  ;;  %v683_v35 = vpop.f32.mrf.mxu1 }
  0xcf   :  { %144 = vst.msk [vmem:[#allocation2 + $0x18] sm:$0xff] %vm19_vm1, %v139_v32  ;;  %v138_v37 = vadd.f32 %v127_v34, %v34_v29  ;;  %242 = vst.msk [vmem:[#allocation2 + $0x20] sm:$0xff] %vm19_vm1, %v238_v33  ;;  %v241_v38 = vadd.f32 %v683_v35, %v149_v31 }
  0xd0   :  { %v229_v39 = vpop.f32.mrf.mxu1 }
  0xd1   :  { %143 = vst.msk [vmem:[#allocation2 + $0x10] sm:$0xff] %vm19_vm1, %v138_v37  ;;  %245 = vst.msk [vmem:[#allocation2 + $0x38] sm:$0xff] %vm19_vm1, %v241_v38  ;;  %v240_v40 = vadd.f32 %v229_v39, %v148_v36 }
  0xd2   :  { %v258_v42 = vld [vmem:[#allocation2 + $0x8] sm:$0xff] }
  0xd3   :  { %244 = vst.msk [vmem:[#allocation2 + $0x30] sm:$0xff] %vm19_vm1, %v240_v40 }
  0xd4   :  { %v257_v41 = vld [vmem:[#allocation2] sm:$0xff]  ;;  %v426_v47 = vld [vmem:[#allocation2 + $0x28] sm:$0xff] }
  0xd5   :  { %703 = vmatprep.mubr.msk.f32.mxu1 %vm19_vm1, %v257_v41 }
  0xd6   :  { %704 = vmatmul.mubr.msk.f32.vlgmr.msra.gmra.mxu1 %vm19_vm1, %v258_v42  ;;  %v425_v43 = vld [vmem:[#allocation2 + $0x20] sm:$0xff]  ;;  %v260_v45 = vld [vmem:[#allocation2 + $0x18] sm:$0xff] }
  0xd7   :  { %718 = vmatpush3.msra.mxu1 %v252_v9  ;;  %725 = vmatprep.mubr.msk.f32.mxu1 %vm19_vm1, %v425_v43 }
  0xd8   :  { %719 = vmatprep.subr.mxu1 %v824_v10  ;;  %v259_v44 = vld [vmem:[#allocation2 + $0x10] sm:$0xff]  ;;  %v428_v48 = vld [vmem:[#allocation2 + $0x38] sm:$0xff] }
  0xd9   :  { %720 = vmatpush3.msra.mxu1 %v824_v10  ;;  %692 = vmatprep.mubr.msk.f32.mxu0 %vm19_vm1, %v259_v44 }
  0xda   :  { %721 = vmatprep.subr.mxu1 %v836_v12  ;;  %693 = vmatmul.mubr.msk.f32.vlgmr.msra.gmra.mxu0 %vm19_vm1, %v260_v45  ;;  %v427_v46 = vld [vmem:[#allocation2 + $0x30] sm:$0xff] }
  0xdb   :  { %707 = vmatpush3.msra.mxu0 %v831_v11  ;;  %722 = vmatpush3.msra.mxu1 %v836_v12 }
  0xdc   :  { %708 = vmatprep.subr.mxu0 %v845_v13  ;;  %723 = vmatprep.subr.mxu1 %v850_v14 }
  0xdd   :  { %709 = vmatpush3.msra.mxu0 %v845_v13  ;;  %724 = vmatpush3.msra.mxu1 %v850_v14 }
  0xde   :  { %710 = vmatprep.subr.mxu0 %v857_v15  ;;  %726 = vmatmul.mubr.msk.f32.vlgmr.msra.gmra.mxu1 %vm19_vm1, %v426_v47 }
  0xdf   :  { %711 = vmatpush3.msra.mxu0 %v857_v15  ;;  %714 = vmatprep.mubr.msk.f32.mxu0 %vm19_vm1, %v427_v46 }
  0xe0   :  { %712 = vmatprep.subr.mxu0 %v253_v16 }
  0xe1   :  { %713 = vmatpush3.msra.mxu0 %v253_v16 }
  0xe2   :  { %715 = vmatmul.mubr.msk.f32.vlgmr.msra.gmra.mxu0 %vm19_vm1, %v428_v48 }
 0x196   :  { %v705_v49 = vpop.f32.mrf.mxu1 }
 0x198   :  { %v414_v52 = vpop.f32.mrf.mxu1 }
 0x19a   :  { %v694_v50 = vpop.f32.mrf.mxu0 }
 0x19b   :  { %v420_v51 = vadd.f32 %v705_v49, %v694_v50 }
 0x19c   :  { %v333_v53 = vpop.f32.mrf.mxu0 }
 0x19d   :  { %424 = vst.msk [vmem:[#allocation3 + $0x8] sm:$0xff] %vm19_vm1, %v420_v51  ;;  %v415_v54 = vadd.f32 %v414_v52, %v333_v53 }
 0x19e   :  { %v727_v55 = vpop.f32.mrf.mxu1 }
 0x19f   :  { %423 = vst.msk [vmem:[#allocation3] sm:$0xff] %vm19_vm1, %v415_v54 }
 0x1a0   :  { %v582_v58 = vpop.f32.mrf.mxu1 }
 0x1a2   :  { %v716_v56 = vpop.f32.mrf.mxu0 }
 0x1a3   :  { %v588_v57 = vadd.f32 %v727_v55, %v716_v56 }
 0x1a4   :  { %v501_v59 = vpop.f32.mrf.mxu0 }
 0x1a5   :  { %593 = vst.msk [vmem:[#allocation3 + $0x18] sm:$0xff] %vm19_vm1, %v588_v57  ;;  %v583_v60 = vadd.f32 %v582_v58, %v501_v59 }
 0x1a7   :  { %592 = vst.msk [vmem:[#allocation3 + $0x10] sm:$0xff] %vm19_vm1, %v583_v60 }
 0x1a8   :  { %743 = shalt.err (!%p740_p4)
}
 0x1a9   :  { %s756_s17 = smov 128   ;;  %s757_s18 = smov 8  }
 0x1aa   :  { %605 = dma.vmem_to_hbm [thread:$0]  %s600_s15, 512, %s904_s3, [#allocation4], %s756_s17, %s756_s17, %s757_s18  }
 0x1ab   :  { %752 = dma.done.wait [#allocation4], 512  }
 0x1ac   :  { %753 = vsyncadd [#allocation4], 4294966784 }
 0x1ad   :  { %609 = vsyncpa [#allocation4], 1 }

</bundles_post_ra>
